<compile_context>
chip_gen: v5e
topology: v5e:2x2
jax: 0.10.0
libtpu: 0.0.40
codegen_flags: <defaults>
</compile_context>

<pallas_src>
from functools import partial

import jax
import jax.numpy as jnp
from jax.experimental import pallas as pl
from jax.experimental.pallas import tpu as pltpu

_LANES = 128


def _mask_kernel(thr_ref, rank_ref, out_ref):
    """thr_ref:  (R, 2)   int32 VMEM — col 0 = n (masked count), col 1 = strokes_eff.
    rank_ref: (R, 128) int32 VMEM — per-position uniform-permutation rank.
    out_ref:  (R, 128) int32 VMEM — mask in {-1, 0, 1}; aliased with rank's HBM buffer."""
    n = thr_ref[:, 0:1]          # (R, 1) broadcast thresholds
    s = thr_ref[:, 1:2]          # (R, 1)
    rank = rank_ref[...]         # (R, 128)
    # branchless: keep -> +1 ; masked -> 0 ; cond (rank < s <= n) -> -1
    out_ref[...] = (rank >= n).astype(jnp.int32) - (rank < s).astype(jnp.int32)


@partial(jax.jit, static_argnames=("batch", "input_shape", "mode_prob", "strokes"))
def mask_generator(key, batch=1, input_shape=(16, 16),
                   mode_prob=(0.92, 0.0, 0.08), strokes=16):
    """JAX/Pallas equivalent of Mask_Generator(input_shape, mode_prob, strokes)(),
    producing `batch` independent masks per call. Returns (batch, H, W) int32."""
    H, W = input_shape
    seq_len = H * W
    pad_len = (-seq_len) % _LANES
    padded = seq_len + pad_len
    rows = padded // _LANES          # sublane rows per batch element
    R = batch * rows                 # total sublane rows in the single block

    k_mode, k_n, k_perm = jax.random.split(key, 3)

    p_random, p_block, p_full = mode_prob
    # mode selection per batch element (random / block / full)
    u = jax.random.uniform(k_mode, (batch,))
    is_random = u < p_random
    # TODO(synk): 'block' mode (select_region-based unmasking) has probability 0.0
    # in the default mode_prob and is not implemented; non-'random' draws fall
    # through to 'full'.

    n_random = jax.random.randint(k_n, (batch,), seq_len // 16, seq_len)
    n = jnp.where(is_random, n_random, seq_len).astype(jnp.int32)
    strokes_eff = jnp.minimum(jnp.int32(strokes), n)
    # per-sublane-row thresholds: (batch, 2) repeated over that sample's rows
    thr = jnp.repeat(jnp.stack([n, strokes_eff], axis=-1), rows, axis=0)  # (R, 2)

    # Per-batch uniform random permutation used directly as the rank field
    # (argsort of a uniform permutation is itself a uniform permutation).
    perm_keys = jax.random.split(k_perm, batch)
    rank = jax.vmap(lambda k: jax.random.permutation(k, seq_len))(perm_keys)
    rank = rank.astype(jnp.int32)
    if pad_len:
        # padding positions get rank >= n so they map to 1 and are sliced away.
        rank = jnp.pad(rank, ((0, 0), (0, pad_len)), constant_values=seq_len)
    rank = rank.reshape(R, _LANES)   # batch folded into sublanes, lane-dense

    # Single grid step over the whole batch; full (8,128)-tile stores; the rank
    # HBM buffer is reused in place for the output.
    # TODO(synk): for very large batches, tile the sublane axis into multiple-of-8
    # chunks and mark the grid axis "parallel" instead of one monolithic block.
    out = pl.pallas_call(
        _mask_kernel,
        out_shape=jax.ShapeDtypeStruct((R, _LANES), jnp.int32),
        grid=(1,),
        in_specs=[pl.BlockSpec((R, 2), lambda i: (0, 0)),
                  pl.BlockSpec((R, _LANES), lambda i: (0, 0))],
        out_specs=pl.BlockSpec((R, _LANES), lambda i: (0, 0)),
        input_output_aliases={1: 0},     # rank (input 1) -> mask (output 0), in place
        compiler_params=pltpu.CompilerParams(
            dimension_semantics=("arbitrary",)),
    )(thr, rank)

    # drop lane padding and restore the (batch, H, W) spatial layout
    out = out.reshape(batch, padded)[:, :seq_len].reshape(batch, H, W)
    return out


if __name__ == "__main__":
    key = jax.random.PRNGKey(0)
    input_shape = (16, 16)
    batch = 8

    masks = mask_generator(key, batch=batch, input_shape=input_shape, strokes=16)
    masks = jax.block_until_ready(masks)

    # sanity checks mirroring the module's invariants
    assert masks.shape == (batch,) + input_shape
    assert masks.dtype == jnp.int32  # original returns numpy int64; int32 on TPU
    seq_len = input_shape[0] * input_shape[1]
    for b in range(batch):
        m = masks[b]
        vals = set(jnp.unique(m).tolist())
        assert vals <= {-1, 0, 1}, vals
        n_cond = int(jnp.sum(m == -1))
        n_masked = int(jnp.sum(m == 0)) + n_cond
        assert 1 <= n_cond <= 16
        assert seq_len // 16 <= n_masked <= seq_len

    print("KERNEL_OK")
</pallas_src>

<mosaic_0001>
module attributes {stable_mosaic.version = 11 : i64} {
  func.func @_mask_kernel(%arg0: i32, %arg1: memref<16x2xi32, #tpu.memory_space<vmem>>, %arg2: memref<16x128xi32, #tpu.memory_space<vmem>>, %arg3: memref<16x128xi32, #tpu.memory_space<vmem>>) attributes {dimension_semantics = [#tpu.dimension_semantics<arbitrary>], iteration_bounds = array<i64: 1>, scalar_prefetch = 0 : i64, scratch_operands = 0 : i64, tpu.core_type = #tpu.core_type<tc>, window_params = [{pipeline_mode = #tpu.pipeline_mode<synchronous>, transform_indices = @transform_0, window_bounds = array<i64: 16, 2>}, {pipeline_mode = #tpu.pipeline_mode<synchronous>, transform_indices = @transform_1, window_bounds = array<i64: 16, 128>}, {pipeline_mode = #tpu.pipeline_mode<synchronous>, transform_indices = @transform_2, window_bounds = array<i64: 16, 128>}]} {
    %c0 = arith.constant 0 : index
    %c0_0 = arith.constant 0 : index
    %0 = vector.load %arg1[%c0, %c0_0] : memref<16x2xi32, #tpu.memory_space<vmem>>, vector<16x1xi32>
    %c0_1 = arith.constant 0 : index
    %c1 = arith.constant 1 : index
    %1 = vector.load %arg1[%c0_1, %c1] : memref<16x2xi32, #tpu.memory_space<vmem>>, vector<16x1xi32>
    %c0_2 = arith.constant 0 : index
    %c0_3 = arith.constant 0 : index
    %2 = vector.load %arg2[%c0_2, %c0_3] : memref<16x128xi32, #tpu.memory_space<vmem>>, vector<16x128xi32>
    %3 = vector.broadcast %0 : vector<16x1xi32> to vector<16x128xi32>
    %4 = arith.cmpi sge, %2, %3 : vector<16x128xi32>
    %5 = arith.extui %4 : vector<16x128xi1> to vector<16x128xi32>
    %6 = vector.broadcast %1 : vector<16x1xi32> to vector<16x128xi32>
    %7 = arith.cmpi slt, %2, %6 : vector<16x128xi32>
    %8 = arith.extui %7 : vector<16x128xi1> to vector<16x128xi32>
    %9 = arith.subi %5, %8 : vector<16x128xi32>
    %c0_4 = arith.constant 0 : index
    %c0_5 = arith.constant 0 : index
    %10 = vector.load %arg3[%c0_4, %c0_5] : memref<16x128xi32, #tpu.memory_space<vmem>>, vector<16x128xi32>
    tpu.vector_store %arg3[%c0_4, %c0_5], %9 {strides = array<i32>} : memref<16x128xi32, #tpu.memory_space<vmem>>, vector<16x128xi32>,
    return
  }
  func.func @transform_0(%arg0: i32) -> (i32, i32) {
    %c0_i32 = arith.constant 0 : i32
    %c0_i32_0 = arith.constant 0 : i32
    %c0_i32_1 = arith.constant 0 : i32
    return %c0_i32, %c0_i32_0 : i32, i32
  }
  func.func @transform_1(%arg0: i32) -> (i32, i32) {
    %c0_i32 = arith.constant 0 : i32
    %c0_i32_0 = arith.constant 0 : i32
    %c0_i32_1 = arith.constant 0 : i32
    return %c0_i32, %c0_i32_0 : i32, i32
  }
  func.func @transform_2(%arg0: i32) -> (i32, i32) {
    %c0_i32 = arith.constant 0 : i32
    %c0_i32_0 = arith.constant 0 : i32
    %c0_i32_1 = arith.constant 0 : i32
    return %c0_i32, %c0_i32_0 : i32, i32
  }
}

</mosaic_0001>

<bundles_post_ra>
// kernel: mask_generator.4
= control target key start
LH: loop header
LB: loop body
LE: loop exit
PB: predicated region body
PF: predicated region fallthrough
CT: control target
= control target key end

     0   :  { %v48_v0 = vmov 1   ;;  %v49_v1 = vmov 0   ;;  %s83_s0 = inlined_call_operand.vmem [shape: s32[16,2], index: 0, kind: input, shape index: {}]   ;;  %s84_s1 = inlined_call_operand.vmem [shape: s32[16,128], index: 1, kind: input, shape index: {}, may-alias: {1,2}]   ;;  %s85_s2 = inlined_call_operand.vmem [shape: s32[16,128], index: 2, kind: output, shape index: {}, may-alias: {1,2}]  }
   0x1   :  { %46 = vset.pattern.permute.xlu1 %v48_v0  ;;  %45 = vset.pattern.permute.xlu0 %v49_v1  ;;  %v11_v2 = vld [vmem:[%s83_s0] sm:$0xff]  ;;  %v12_v3 = vld [vmem:[%s83_s0 + $0x8] sm:$0xff] }
   0x2   :  { %26 = vperm.xlu1 %46, %v11_v2   ;;  %16 = vperm.xlu0 %45, %v11_v2   ;;  %v13_v4 = vld [vmem:[%s84_s1] sm:$0xff] }
   0xa   :  { %29 = vperm.xlu1 %46, %v12_v3   ;;  %19 = vperm.xlu0 %45, %v12_v3  }
  0x12   :  { %47 = vset.pattern.permute.xlu0 %v48_v0 }
  0x74   :  { %v27_v5 = vpop.permute.xlu1 %26  ;;  %v17_v6 = vpop.permute.xlu0 %16 }
  0x75   :  { %vm31_vm0 = vcmp.lt.s32.totalorder %v13_v4, %v27_v5  ;;  %vm21_vm1 = vcmp.ge.s32.totalorder %v13_v4, %v17_v6 }
  0x76   :  { %v33_v7 = vsel %vm31_vm0, 1, %v49_v1  ;;  %v23_v8 = vsel %vm21_vm1, 1, %v49_v1 }
  0x77   :  { %v35_v9 = vsub.s32 %v23_v8, %v33_v7 }
  0x79   :  { %37 = vst [vmem:[%s85_s2] sm:$0xff] %v35_v9 }
  0x7c   :  { %v30_v11 = vpop.permute.xlu1 %29  ;;  %v20_v12 = vpop.permute.xlu0 %19 }
  0x80   :  { %v14_v10 = vld [vmem:[%s84_s1 + $0x8] sm:$0xff] }
  0x81   :  { %vm32_vm2 = vcmp.lt.s32.totalorder %v14_v10, %v30_v11  ;;  %vm22_vm3 = vcmp.ge.s32.totalorder %v14_v10, %v20_v12 }
  0x82   :  { %v34_v13 = vsel %vm32_vm2, 1, %v49_v1  ;;  %v24_v14 = vsel %vm22_vm3, 1, %v49_v1 }
  0x83   :  { %v36_v15 = vsub.s32 %v24_v14, %v34_v13 }
  0x85   :  { %38 = vst [vmem:[%s85_s2 + $0x8] sm:$0xff] %v36_v15 }

</bundles_post_ra>
